<compile_context>
chip_gen: v5e
topology: v5e:2x2
jax: 0.10.0
libtpu: 0.0.40
codegen_flags: <defaults>
</compile_context>

<pallas_src>
import functools

import jax
import jax.numpy as jnp
from jax.experimental import pallas as pl
from jax.experimental.pallas import tpu as pltpu

D_IN = 2      # d
H = 100       # logical hidden width
HP = 128      # padded hidden width (full lanes / sublanes)
D_OUT = 1


def _round_up(x, m):
    return ((x + m - 1) // m) * m


def _mlp_kernel(xT_ref, w1c0_ref, w1c1_ref, b1_ref, w2t_ref, b2_ref,
                w3t_ref, b3_ref, o_ref):
    # xT_ref : (2, tm)   batch tile; features on sublanes, batch on lanes
    # w1c0/1 : (HP, 1)   columns of padded W1^T (one per input feature)
    # b1, b2 : (HP, 1)
    # w2t    : (HP, HP)  padded W2^T
    # w3t    : (1, HP)   padded W3^T
    # b3     : (1, 1)    scalar bias in SMEM
    # o_ref  : (1, tm)   lane-dense output row
    x0 = xT_ref[0:1, :]                                   # (1, tm)
    x1 = xT_ref[1:2, :]                                   # (1, tm)

    # Layer 1 (K = 2): VPU broadcast-FMAs, keep the MXU free.
    h1 = w1c0_ref[...] * x0 + w1c1_ref[...] * x1 + b1_ref[...]   # (HP, tm)
    h1 = jnp.maximum(h1, 0.0)

    # Layer 2: 128x128 @ 128xTM on the MXU, f32 accumulation.
    h2 = jnp.dot(w2t_ref[...], h1, preferred_element_type=jnp.float32) + b2_ref[...]
    h2 = jnp.maximum(h2, 0.0)

    # Layer 3: 1x128 @ 128xTM -> lane-dense (1, tm) row.
    out = jnp.dot(w3t_ref[...], h2, preferred_element_type=jnp.float32)
    o_ref[...] = out + b3_ref[0, 0]


def _pad_params(params):
    """Transpose + zero-pad parameters to the 128-wide kernel layout."""
    w1, b1, w2, b2, w3, b3 = params
    f32 = jnp.float32
    w1t = jnp.zeros((HP, D_IN), f32).at[:H, :].set(w1.T.astype(f32))
    w1c0 = w1t[:, 0:1]
    w1c1 = w1t[:, 1:2]
    b1c = jnp.zeros((HP, 1), f32).at[:H, 0].set(b1.astype(f32))
    w2t = jnp.zeros((HP, HP), f32).at[:H, :H].set(w2.T.astype(f32))
    b2c = jnp.zeros((HP, 1), f32).at[:H, 0].set(b2.astype(f32))
    w3t = jnp.zeros((1, HP), f32).at[0, :H].set(w3[:, 0].astype(f32))
    b3s = jnp.reshape(b3, (1, 1)).astype(f32)
    return w1c0, w1c1, b1c, w2t, b2c, w3t, b3s


@functools.partial(jax.jit, static_argnames=("tm_max",))
def discriminator_location(x, params, tm_max=1024):
    """x: (N, D_IN) float32.  Returns (N, 1) float32, same math as the torch module."""
    n = x.shape[0]
    # Large lane tile to amortize per-step overhead; never larger than needed.
    tm = min(int(tm_max), _round_up(n, 128))
    n_pad = _round_up(n, tm)
    n_blocks = n_pad // tm

    # Batch on the lane axis: x^T, zero-padded to (D_IN, n_pad).
    xT = jnp.zeros((D_IN, n_pad), jnp.float32).at[:, :n].set(x.T.astype(jnp.float32))
    w1c0, w1c1, b1c, w2t, b2c, w3t, b3s = _pad_params(params)

    const = lambda i: (0, 0)
    out2d = pl.pallas_call(
        _mlp_kernel,
        out_shape=jax.ShapeDtypeStruct((n_blocks, tm), jnp.float32),
        grid_spec=pltpu.PrefetchScalarGridSpec(
            num_scalar_prefetch=0,
            grid=(n_blocks,),
            in_specs=[
                pl.BlockSpec((D_IN, tm), lambda i: (0, i)),          # x^T tile
                pl.BlockSpec((HP, 1), const),                        # W1^T col 0
                pl.BlockSpec((HP, 1), const),                        # W1^T col 1
                pl.BlockSpec((HP, 1), const),                        # b1
                pl.BlockSpec((HP, HP), const),                       # W2^T
                pl.BlockSpec((HP, 1), const),                        # b2
                pl.BlockSpec((1, HP), const),                        # W3^T
                pl.BlockSpec(memory_space=pltpu.MemorySpace.SMEM),   # b3 scalar
            ],
            out_specs=pl.BlockSpec((1, tm), lambda i: (i, 0)),
        ),
        compiler_params=pltpu.CompilerParams(
            dimension_semantics=("parallel",),   # batch tiles shard across TCs
        ),
    )(xT, w1c0, w1c1, b1c, w2t, b2c, w3t, b3s)

    return out2d.reshape(n_pad)[:n].reshape(n, D_OUT)


def init_params(key):
    """PyTorch Linear default init: U(-1/sqrt(fan_in), +1/sqrt(fan_in))."""
    ks = jax.random.split(key, 6)

    def lin(kw, kb, fan_in, fan_out):
        bound = float(1.0 / (fan_in ** 0.5))
        w = jax.random.uniform(kw, (fan_in, fan_out), jnp.float32, -bound, bound)
        b = jax.random.uniform(kb, (fan_out,), jnp.float32, -bound, bound)
        return w, b

    w1, b1 = lin(ks[0], ks[1], D_IN, H)
    w2, b2 = lin(ks[2], ks[3], H, H)
    w3, b3 = lin(ks[4], ks[5], H, D_OUT)
    return (w1, b1, w2, b2, w3, b3)


def _reference(x, params):
    w1, b1, w2, b2, w3, b3 = params
    h1 = jnp.maximum(x @ w1 + b1, 0.0)
    h2 = jnp.maximum(h1 @ w2 + b2, 0.0)
    return h2 @ w3 + b3


if __name__ == "__main__":
    key = jax.random.PRNGKey(0)
    k_x, k_p = jax.random.split(key)
    params = init_params(k_p)

    # Small batch consistent with the module (2-D locations).
    N = 16
    x = jax.random.normal(k_x, (N, D_IN), dtype=jnp.float32)
    out = jax.block_until_ready(discriminator_location(x, params))
    ref = _reference(x, params)
    assert out.shape == (N, D_OUT)
    assert jnp.allclose(out, ref, atol=1e-4, rtol=1e-4), float(jnp.max(jnp.abs(out - ref)))

    # Non-multiple batch exercises the pad-and-slice path and a multi-step grid.
    N2 = 1000
    x2 = jax.random.normal(k_x, (N2, D_IN), dtype=jnp.float32)
    out2 = jax.block_until_ready(discriminator_location(x2, params, tm_max=256))
    ref2 = _reference(x2, params)
    assert out2.shape == (N2, D_OUT)
    assert jnp.allclose(out2, ref2, atol=1e-4, rtol=1e-4), float(jnp.max(jnp.abs(out2 - ref2)))

    print("KERNEL_OK")
</pallas_src>

<mosaic_0001>
module attributes {stable_mosaic.version = 11 : i64} {
  func.func @_mlp_kernel(%arg0: i32, %arg1: memref<2x128xf32, #tpu.memory_space<vmem>>, %arg2: memref<128x1xf32, #tpu.memory_space<vmem>>, %arg3: memref<128x1xf32, #tpu.memory_space<vmem>>, %arg4: memref<128x1xf32, #tpu.memory_space<vmem>>, %arg5: memref<128x128xf32, #tpu.memory_space<vmem>>, %arg6: memref<128x1xf32, #tpu.memory_space<vmem>>, %arg7: memref<1x128xf32, #tpu.memory_space<vmem>>, %arg8: memref<1x1xf32, #tpu.memory_space<smem>>, %arg9: memref<1x128xf32, #tpu.memory_space<vmem>>) attributes {dimension_semantics = [#tpu.dimension_semantics<parallel>], iteration_bounds = array<i64: 1>, scalar_prefetch = 0 : i64, scratch_operands = 0 : i64, tpu.core_type = #tpu.core_type<tc>, window_params = [{transform_indices = @transform_0, window_bounds = array<i64: 2, 128>}, {pipeline_mode = #tpu.pipeline_mode<synchronous>, transform_indices = @transform_1, window_bounds = array<i64: 128, 1>}, {pipeline_mode = #tpu.pipeline_mode<synchronous>, transform_indices = @transform_2, window_bounds = array<i64: 128, 1>}, {pipeline_mode = #tpu.pipeline_mode<synchronous>, transform_indices = @transform_3, window_bounds = array<i64: 128, 1>}, {pipeline_mode = #tpu.pipeline_mode<synchronous>, transform_indices = @transform_4, window_bounds = array<i64: 128, 128>}, {pipeline_mode = #tpu.pipeline_mode<synchronous>, transform_indices = @transform_5, window_bounds = array<i64: 128, 1>}, {pipeline_mode = #tpu.pipeline_mode<synchronous>, transform_indices = @transform_6, window_bounds = array<i64: 1, 128>}, {transform_indices = @transform_7, window_bounds = array<i64: 1, 1>}, {transform_indices = @transform_8, window_bounds = array<i64: 1, 128>}]} {
    %c0 = arith.constant 0 : index
    %c0_0 = arith.constant 0 : index
    %0 = vector.load %arg1[%c0, %c0_0] : memref<2x128xf32, #tpu.memory_space<vmem>>, vector<1x128xf32>
    %c1 = arith.constant 1 : index
    %c0_1 = arith.constant 0 : index
    %1 = vector.load %arg1[%c1, %c0_1] : memref<2x128xf32, #tpu.memory_space<vmem>>, vector<1x128xf32>
    %c0_2 = arith.constant 0 : index
    %c0_3 = arith.constant 0 : index
    %2 = vector.load %arg2[%c0_2, %c0_3] : memref<128x1xf32, #tpu.memory_space<vmem>>, vector<128x1xf32>
    %3 = vector.broadcast %2 : vector<128x1xf32> to vector<128x128xf32>
    %4 = vector.broadcast %0 : vector<1x128xf32> to vector<128x128xf32>
    %5 = arith.mulf %3, %4 : vector<128x128xf32>
    %c0_4 = arith.constant 0 : index
    %c0_5 = arith.constant 0 : index
    %6 = vector.load %arg3[%c0_4, %c0_5] : memref<128x1xf32, #tpu.memory_space<vmem>>, vector<128x1xf32>
    %7 = vector.broadcast %6 : vector<128x1xf32> to vector<128x128xf32>
    %8 = vector.broadcast %1 : vector<1x128xf32> to vector<128x128xf32>
    %9 = arith.mulf %7, %8 : vector<128x128xf32>
    %10 = arith.addf %5, %9 : vector<128x128xf32>
    %c0_6 = arith.constant 0 : index
    %c0_7 = arith.constant 0 : index
    %11 = vector.load %arg4[%c0_6, %c0_7] : memref<128x1xf32, #tpu.memory_space<vmem>>, vector<128x1xf32>
    %12 = vector.broadcast %11 : vector<128x1xf32> to vector<128x128xf32>
    %13 = arith.addf %10, %12 : vector<128x128xf32>
    %cst = arith.constant 0.000000e+00 : f32
    %14 = vector.broadcast %cst : f32 to vector<128x128xf32>
    %15 = arith.maximumf %13, %14 : vector<128x128xf32>
    %c0_8 = arith.constant 0 : index
    %c0_9 = arith.constant 0 : index
    %16 = vector.load %arg5[%c0_8, %c0_9] : memref<128x128xf32, #tpu.memory_space<vmem>>, vector<128x128xf32>
    %cst_10 = arith.constant dense<0.000000e+00> : vector<128x128xf32>
    %17 = tpu.matmul %16, %15, %cst_10 {dimension_numbers = #tpu.dot_dimension_numbers<[1], [0], [0], [1], [0, 0, 1, 1], [], []>} : vector<128x128xf32>, vector<128x128xf32>, vector<128x128xf32> -> vector<128x128xf32>
    %c0_11 = arith.constant 0 : index
    %c0_12 = arith.constant 0 : index
    %18 = vector.load %arg6[%c0_11, %c0_12] : memref<128x1xf32, #tpu.memory_space<vmem>>, vector<128x1xf32>
    %19 = vector.broadcast %18 : vector<128x1xf32> to vector<128x128xf32>
    %20 = arith.addf %17, %19 : vector<128x128xf32>
    %cst_13 = arith.constant 0.000000e+00 : f32
    %21 = vector.broadcast %cst_13 : f32 to vector<128x128xf32>
    %22 = arith.maximumf %20, %21 : vector<128x128xf32>
    %c0_14 = arith.constant 0 : index
    %c0_15 = arith.constant 0 : index
    %23 = vector.load %arg7[%c0_14, %c0_15] : memref<1x128xf32, #tpu.memory_space<vmem>>, vector<1x128xf32>
    %cst_16 = arith.constant dense<0.000000e+00> : vector<1x128xf32>
    %24 = tpu.matmul %23, %22, %cst_16 {dimension_numbers = #tpu.dot_dimension_numbers<[1], [0], [0], [1], [0, 0, 1, 1], [], []>} : vector<1x128xf32>, vector<128x128xf32>, vector<1x128xf32> -> vector<1x128xf32>
    %c0_17 = arith.constant 0 : index
    %c0_18 = arith.constant 0 : index
    %25 = memref.load %arg8[%c0_17, %c0_18] : memref<1x1xf32, #tpu.memory_space<smem>>
    %26 = vector.broadcast %25 : f32 to vector<1x128xf32>
    %27 = arith.addf %24, %26 : vector<1x128xf32>
    %c0_19 = arith.constant 0 : index
    %c0_20 = arith.constant 0 : index
    %28 = vector.load %arg9[%c0_19, %c0_20] : memref<1x128xf32, #tpu.memory_space<vmem>>, vector<1x128xf32>
    tpu.vector_store %arg9[%c0_19, %c0_20], %27 {strides = array<i32>} : memref<1x128xf32, #tpu.memory_space<vmem>>, vector<1x128xf32>,
    return
  }
  func.func @transform_0(%arg0: i32) -> (i32, i32) {
    %c0_i32 = arith.constant 0 : i32
    %c0_i32_0 = arith.constant 0 : i32
    return %c0_i32, %arg0 : i32, i32
  }
  func.func @transform_1(%arg0: i32) -> (i32, i32) {
    %c0_i32 = arith.constant 0 : i32
    %c0_i32_0 = arith.constant 0 : i32
    %c0_i32_1 = arith.constant 0 : i32
    return %c0_i32, %c0_i32_0 : i32, i32
  }
  func.func @transform_2(%arg0: i32) -> (i32, i32) {
    %c0_i32 = arith.constant 0 : i32
    %c0_i32_0 = arith.constant 0 : i32
    %c0_i32_1 = arith.constant 0 : i32
    return %c0_i32, %c0_i32_0 : i32, i32
  }
  func.func @transform_3(%arg0: i32) -> (i32, i32) {
    %c0_i32 = arith.constant 0 : i32
    %c0_i32_0 = arith.constant 0 : i32
    %c0_i32_1 = arith.constant 0 : i32
    return %c0_i32, %c0_i32_0 : i32, i32
  }
  func.func @transform_4(%arg0: i32) -> (i32, i32) {
    %c0_i32 = arith.constant 0 : i32
    %c0_i32_0 = arith.constant 0 : i32
    %c0_i32_1 = arith.constant 0 : i32
    return %c0_i32, %c0_i32_0 : i32, i32
  }
  func.func @transform_5(%arg0: i32) -> (i32, i32) {
    %c0_i32 = arith.constant 0 : i32
    %c0_i32_0 = arith.constant 0 : i32
    %c0_i32_1 = arith.constant 0 : i32
    return %c0_i32, %c0_i32_0 : i32, i32
  }
  func.func @transform_6(%arg0: i32) -> (i32, i32) {
    %c0_i32 = arith.constant 0 : i32
    %c0_i32_0 = arith.constant 0 : i32
    %c0_i32_1 = arith.constant 0 : i32
    return %c0_i32, %c0_i32_0 : i32, i32
  }
  func.func @transform_7(%arg0: i32) -> (i32, i32) {
    %c0_i32 = arith.constant 0 : i32
    %c0_i32_0 = arith.constant 0 : i32
    %c0_i32_1 = arith.constant 0 : i32
    return %c0_i32, %c0_i32_0 : i32, i32
  }
  func.func @transform_8(%arg0: i32) -> (i32, i32) {
    %c0_i32 = arith.constant 0 : i32
    %c0_i32_0 = arith.constant 0 : i32
    return %arg0, %c0_i32 : i32, i32
  }
}

</mosaic_0001>

<bundles_post_ra>
// kernel: discriminator_location.1
= control target key start
LH: loop header
LB: loop body
LE: loop exit
PB: predicated region body
PF: predicated region fallthrough
CT: control target
= control target key end

     0   :  { %v661_v0 = vmov 0   ;;  %s1013_s1 = inlined_call_operand.vmem [shape: f32[128,1], index: 1, kind: input, shape index: {}]   ;;  %s1014_s2 = inlined_call_operand.vmem [shape: f32[128,1], index: 2, kind: input, shape index: {}]   ;;  %s1015_s0 = inlined_call_operand.vmem [shape: f32[2,128], index: 0, kind: input, shape index: {}]   ;;  %s1016_s3 = inlined_call_operand.vmem [shape: f32[128,1], index: 3, kind: input, shape index: {}]   ;;  %s1017_s5 = inlined_call_operand.vmem [shape: f32[128,1], index: 5, kind: input, shape index: {}]   ;;  %s1018_s4 = inlined_call_operand.vmem [shape: f32[128,128], index: 4, kind: input, shape index: {}]   ;;  %s1019_s6 = inlined_call_operand.vmem [shape: f32[1,128], index: 6, kind: input, shape index: {}]   ;;  %s1020_s7 = inlined_call_operand.<no memory space> [shape: f32[1,1], index: 7, kind: input, shape index: {}]   ;;  %s1021_s8 = inlined_call_operand.vmem [shape: f32[1,128], index: 8, kind: output, shape index: {}]  }
   0x1   :  { %658 = vset.pattern.permute.xlu2 %v661_v0  ;;  %657 = vset.pattern.permute.xlu1 %v661_v0  ;;  %v47_v1 = vld [vmem:[%s1013_s1 + $0x78] sm:$0xff]  ;;  %v46_v2 = vld [vmem:[%s1013_s1 + $0x70] sm:$0xff]  ;;  %v45_v3 = vld [vmem:[%s1013_s1 + $0x68] sm:$0xff] }
   0x2   :  { %656 = vset.pattern.permute.xlu0 %v661_v0  ;;  %120 = vperm.xlu1 %657, %v46_v2   ;;  %v159_v4 = vld [vmem:[%s1014_s2 + $0x70] sm:$0xff]  ;;  %v160_v5 = vld [vmem:[%s1014_s2 + $0x78] sm:$0xff]  ;;  %v158_v6 = vld [vmem:[%s1014_s2 + $0x68] sm:$0xff] }
   0x3   :  { %125 = vperm.xlu0 %656, %v47_v1   ;;  %115 = vperm.xlu2 %658, %v45_v3   ;;  %v44_v7 = vld [vmem:[%s1013_s1 + $0x60] sm:$0xff]  ;;  %v289_v8 = vld [vmem:[%s1016_s3 + $0x78] sm:$0xff]  ;;  %v288_v11 = vld [vmem:[%s1016_s3 + $0x70] sm:$0xff] }
   0x4   :  { %v157_v9 = vld [vmem:[%s1014_s2 + $0x60] sm:$0xff]  ;;  %v43_v10 = vld [vmem:[%s1013_s1 + $0x58] sm:$0xff]  ;;  %v42_v13 = vld [vmem:[%s1013_s1 + $0x50] sm:$0xff] }
   0x5   :  { %v156_v12 = vld [vmem:[%s1014_s2 + $0x58] sm:$0xff]  ;;  %v287_v14 = vld [vmem:[%s1016_s3 + $0x68] sm:$0xff]  ;;  %v155_v15 = vld [vmem:[%s1014_s2 + $0x50] sm:$0xff] }
   0x6   :  { %v41_v16 = vld [vmem:[%s1013_s1 + $0x48] sm:$0xff]  ;;  %v286_v17 = vld [vmem:[%s1016_s3 + $0x60] sm:$0xff]  ;;  %v285_v20 = vld [vmem:[%s1016_s3 + $0x58] sm:$0xff] }
   0x7   :  { %v154_v18 = vld [vmem:[%s1014_s2 + $0x48] sm:$0xff]  ;;  %v40_v19 = vld [vmem:[%s1013_s1 + $0x40] sm:$0xff]  ;;  %v39_v22 = vld [vmem:[%s1013_s1 + $0x38] sm:$0xff] }
   0x8   :  { %v153_v21 = vld [vmem:[%s1014_s2 + $0x40] sm:$0xff]  ;;  %v284_v23 = vld [vmem:[%s1016_s3 + $0x50] sm:$0xff]  ;;  %v152_v24 = vld [vmem:[%s1014_s2 + $0x38] sm:$0xff] }
   0x9   :  { %v38_v25 = vld [vmem:[%s1013_s1 + $0x30] sm:$0xff]  ;;  %v283_v26 = vld [vmem:[%s1016_s3 + $0x48] sm:$0xff]  ;;  %v282_v29 = vld [vmem:[%s1016_s3 + $0x40] sm:$0xff] }
   0xa   :  { %233 = vperm.xlu1 %657, %v159_v4   ;;  %v151_v27 = vld [vmem:[%s1014_s2 + $0x30] sm:$0xff]  ;;  %v37_v28 = vld [vmem:[%s1013_s1 + $0x28] sm:$0xff]  ;;  %v36_v31 = vld [vmem:[%s1013_s1 + $0x20] sm:$0xff] }
   0xb   :  { %238 = vperm.xlu0 %656, %v160_v5   ;;  %228 = vperm.xlu2 %658, %v158_v6   ;;  %v150_v30 = vld [vmem:[%s1014_s2 + $0x28] sm:$0xff]  ;;  %v281_v32 = vld [vmem:[%s1016_s3 + $0x38] sm:$0xff]  ;;  %v149_v33 = vld [vmem:[%s1014_s2 + $0x20] sm:$0xff] }
   0xc   :  { %v35_v34 = vld [vmem:[%s1013_s1 + $0x18] sm:$0xff]  ;;  %v280_v35 = vld [vmem:[%s1016_s3 + $0x30] sm:$0xff]  ;;  %v279_v39 = vld [vmem:[%s1016_s3 + $0x28] sm:$0xff] }
   0xd   :  { %v148_v36 = vld [vmem:[%s1014_s2 + $0x18] sm:$0xff]  ;;  %v34_v38 = vld [vmem:[%s1013_s1 + $0x10] sm:$0xff]  ;;  %v33_v42 = vld [vmem:[%s1013_s1 + $0x8] sm:$0xff] }
   0xe   :  { %v147_v40 = vld [vmem:[%s1014_s2 + $0x10] sm:$0xff]  ;;  %v278_v43 = vld [vmem:[%s1016_s3 + $0x20] sm:$0xff]  ;;  %v146_v44 = vld [vmem:[%s1014_s2 + $0x8] sm:$0xff] }
   0xf   :  { %v32_v46 = vld [vmem:[%s1013_s1] sm:$0xff]  ;;  %v277_v47 = vld [vmem:[%s1016_s3 + $0x18] sm:$0xff]  ;;  %v275_v52 = vld [vmem:[%s1016_s3 + $0x8] sm:$0xff] }
  0x10   :  { %v145_v48 = vld [vmem:[%s1014_s2] sm:$0xff]  ;;  %v276_v53 = vld [vmem:[%s1016_s3 + $0x10] sm:$0xff]  ;;  %v433_v61 = vld [vmem:[%s1017_s5 + $0x78] sm:$0xff] }
  0x11   :  { %v274_v54 = vld [vmem:[%s1016_s3] sm:$0xff]  ;;  %v432_v59 = vld [vmem:[%s1017_s5 + $0x70] sm:$0xff]  ;;  %v431_v62 = vld [vmem:[%s1017_s5 + $0x68] sm:$0xff] }
  0x12   :  { %110 = vperm.xlu1 %657, %v44_v7   ;;  %v860_v57 = vld [vmem:[%s1015_s0] ss:$0 sm:$0xff]  ;;  %v865_v58 = vld [vmem:[%s1015_s0 + $0x1] ss:$0 sm:$0xff] }
  0x13   :  { %367 = vperm.xlu0 %656, %v289_v8   ;;  %223 = vperm.xlu2 %658, %v157_v9   ;;  %v430_v7 = vld [vmem:[%s1017_s5 + $0x60] sm:$0xff]  ;;  %v428_v8 = vld [vmem:[%s1017_s5 + $0x50] sm:$0xff]  ;;  %v429_v9 = vld [vmem:[%s1017_s5 + $0x58] sm:$0xff] }
  0x1a   :  { %105 = vperm.xlu1 %657, %v43_v10  }
  0x1b   :  { %362 = vperm.xlu0 %656, %v288_v11   ;;  %218 = vperm.xlu2 %658, %v156_v12  }
  0x22   :  { %100 = vperm.xlu1 %657, %v42_v13  }
  0x23   :  { %357 = vperm.xlu0 %656, %v287_v14   ;;  %213 = vperm.xlu2 %658, %v155_v15  }
  0x2a   :  { %95 = vperm.xlu1 %657, %v41_v16  }
  0x2b   :  { %352 = vperm.xlu0 %656, %v286_v17   ;;  %208 = vperm.xlu2 %658, %v154_v18  }
  0x32   :  { %90 = vperm.xlu1 %657, %v40_v19   ;;  %v427_v19 = vld [vmem:[%s1017_s5 + $0x48] sm:$0xff] }
  0x33   :  { %347 = vperm.xlu0 %656, %v285_v20   ;;  %203 = vperm.xlu2 %658, %v153_v21   ;;  %v425_v20 = vld [vmem:[%s1017_s5 + $0x38] sm:$0xff]  ;;  %v426_v21 = vld [vmem:[%s1017_s5 + $0x40] sm:$0xff] }
  0x3a   :  { %85 = vperm.xlu1 %657, %v39_v22  }
  0x3b   :  { %342 = vperm.xlu0 %656, %v284_v23   ;;  %198 = vperm.xlu2 %658, %v152_v24  }
  0x42   :  { %80 = vperm.xlu1 %657, %v38_v25  }
  0x43   :  { %337 = vperm.xlu0 %656, %v283_v26   ;;  %193 = vperm.xlu2 %658, %v151_v27  }
  0x4a   :  { %75 = vperm.xlu1 %657, %v37_v28  }
  0x4b   :  { %332 = vperm.xlu0 %656, %v282_v29   ;;  %188 = vperm.xlu2 %658, %v150_v30   ;;  %v424_v29 = vld [vmem:[%s1017_s5 + $0x30] sm:$0xff]  ;;  %v422_v30 = vld [vmem:[%s1017_s5 + $0x20] sm:$0xff] }
  0x52   :  { %70 = vperm.xlu1 %657, %v36_v31   ;;  %v423_v31 = vld [vmem:[%s1017_s5 + $0x28] sm:$0xff] }
  0x53   :  { %327 = vperm.xlu0 %656, %v281_v32   ;;  %183 = vperm.xlu2 %658, %v149_v33  }
  0x5a   :  { %65 = vperm.xlu1 %657, %v35_v34  }
  0x5b   :  { %322 = vperm.xlu0 %656, %v280_v35   ;;  %178 = vperm.xlu2 %658, %v148_v36  }
  0x5d   :  { %v815_v37 = vpop.permute.xlu2 %115 }
  0x5e   :  { %v142_v16 = vmul.f32 %v860_v57, %v815_v37 }
  0x62   :  { %60 = vperm.xlu1 %657, %v34_v38  }
  0x63   :  { %317 = vperm.xlu0 %656, %v279_v39   ;;  %173 = vperm.xlu2 %658, %v147_v40   ;;  %v421_v40 = vld [vmem:[%s1017_s5 + $0x18] sm:$0xff] }
  0x65   :  { %v229_v41 = vpop.permute.xlu2 %228 }
  0x66   :  { %v255_v17 = vmul.f32 %v865_v58, %v229_v41  ;;  %v419_v41 = vld [vmem:[%s1017_s5 + $0x8] sm:$0xff] }
  0x68   :  { %v271_v22 = vadd.f32 %v255_v17, %v142_v16 }
  0x6a   :  { %55 = vperm.xlu1 %657, %v33_v42   ;;  %v420_v42 = vld [vmem:[%s1017_s5 + $0x10] sm:$0xff] }
  0x6b   :  { %312 = vperm.xlu0 %656, %v278_v43   ;;  %168 = vperm.xlu2 %658, %v146_v44  }
  0x6d   :  { %v835_v45 = vpop.permute.xlu2 %223 }
  0x6e   :  { %v254_v32 = vmul.f32 %v865_v58, %v835_v45 }
  0x72   :  { %50 = vperm.xlu1 %657, %v32_v46  }
  0x73   :  { %307 = vperm.xlu0 %656, %v277_v47   ;;  %163 = vperm.xlu2 %658, %v145_v48  }
  0x74   :  { %v121_v49 = vpop.permute.xlu1 %120 }
  0x75   :  { %v126_v50 = vpop.permute.xlu0 %125  ;;  %v846_v51 = vpop.permute.xlu2 %218  ;;  %v143_v10 = vmul.f32 %v860_v57, %v121_v49 }
  0x76   :  { %v144_v0 = vmul.f32 %v860_v57, %v126_v50  ;;  %v253_v43 = vmul.f32 %v865_v58, %v846_v51  ;;  %v418_v50 = vld [vmem:[%s1017_s5] sm:$0xff] }
  0x7a   :  { %297 = vperm.xlu1 %657, %v275_v52  }
  0x7b   :  { %302 = vperm.xlu0 %656, %v276_v53   ;;  %292 = vperm.xlu2 %658, %v274_v54  }
  0x7c   :  { %v234_v55 = vpop.permute.xlu1 %233 }
  0x7d   :  { %v239_v56 = vpop.permute.xlu0 %238  ;;  %v877_v63 = vpop.permute.xlu2 %213  ;;  %v256_v5 = vmul.f32 %v865_v58, %v234_v55 }
  0x7e   :  { %v257_v60 = vmul.f32 %v865_v58, %v239_v56  ;;  %v252_v51 = vmul.f32 %v865_v58, %v877_v63 }
  0x7f   :  { %v272_v12 = vadd.f32 %v256_v5, %v143_v10 }
  0x80   :  { %v273_v1 = vadd.f32 %v257_v60, %v144_v0 }
  0x82   :  { %506 = vperm.xlu1 %657, %v432_v59  }
  0x83   :  { %511 = vperm.xlu0 %656, %v433_v61   ;;  %501 = vperm.xlu2 %658, %v431_v62  }
  0x84   :  { %v111_v2 = vpop.permute.xlu1 %110 }
  0x85   :  { %v368_v3 = vpop.permute.xlu0 %367  ;;  %v891_v11 = vpop.permute.xlu2 %208  ;;  %v141_v27 = vmul.f32 %v860_v57, %v111_v2 }
  0x86   :  { %v385_v4 = vadd.f32 %v368_v3, %v273_v1  ;;  %v251_v61 = vmul.f32 %v865_v58, %v891_v11 }
  0x87   :  { %v270_v33 = vadd.f32 %v254_v32, %v141_v27 }
  0x88   :  { %v401_v6 = vmax.f32 %v385_v4, 0.0 }
  0x8a   :  { %514 = vmatpush.msra.mxu0 %v401_v6  ;;  %623 = vmatpush.msra.mxu2 %v401_v6 }
  0x8b   :  { %624 = vmatpush.msra.mxu3 %v401_v6  ;;  %496 = vperm.xlu0 %656, %v430_v7  }
  0x8c   :  { %486 = vperm.xlu2 %658, %v428_v8   ;;  %491 = vperm.xlu1 %657, %v429_v9   ;;  %v106_v13 = vpop.permute.xlu1 %105 }
  0x8d   :  { %v363_v14 = vpop.permute.xlu0 %362  ;;  %v204_v24 = vpop.permute.xlu2 %203  ;;  %v140_v38 = vmul.f32 %v860_v57, %v106_v13 }
  0x8e   :  { %v384_v15 = vadd.f32 %v363_v14, %v272_v12  ;;  %v250_v5 = vmul.f32 %v865_v58, %v204_v24 }
  0x8f   :  { %v269_v44 = vadd.f32 %v253_v43, %v140_v38 }
  0x90   :  { %v400_v18 = vmax.f32 %v384_v15, 0.0 }
  0x92   :  { %515 = vmatpush.msra.mxu0 %v400_v18  ;;  %625 = vmatpush.msra.mxu2 %v400_v18 }
  0x93   :  { %626 = vmatpush.msra.mxu3 %v400_v18  ;;  %481 = vperm.xlu0 %656, %v427_v19  }
  0x94   :  { %471 = vperm.xlu2 %658, %v425_v20   ;;  %476 = vperm.xlu1 %657, %v426_v21   ;;  %v101_v23 = vpop.permute.xlu1 %100 }
  0x95   :  { %v358_v25 = vpop.permute.xlu0 %357  ;;  %v199_v37 = vpop.permute.xlu2 %198  ;;  %v139_v48 = vmul.f32 %v860_v57, %v101_v23 }
  0x96   :  { %v383_v26 = vadd.f32 %v358_v25, %v271_v22  ;;  %v249_v13 = vmul.f32 %v865_v58, %v199_v37 }
  0x97   :  { %v268_v53 = vadd.f32 %v252_v51, %v139_v48 }
  0x98   :  { %v399_v28 = vmax.f32 %v383_v26, 0.0 }
  0x9a   :  { %516 = vmatpush.msra.mxu0 %v399_v28  ;;  %627 = vmatpush.msra.mxu2 %v399_v28 }
  0x9b   :  { %628 = vmatpush.msra.mxu3 %v399_v28  ;;  %466 = vperm.xlu0 %656, %v424_v29  }
  0x9c   :  { %456 = vperm.xlu2 %658, %v422_v30   ;;  %461 = vperm.xlu1 %657, %v423_v31   ;;  %v96_v34 = vpop.permute.xlu1 %95 }
  0x9d   :  { %v353_v35 = vpop.permute.xlu0 %352  ;;  %v194_v52 = vpop.permute.xlu2 %193  ;;  %v138_v59 = vmul.f32 %v860_v57, %v96_v34 }
  0x9e   :  { %v382_v36 = vadd.f32 %v353_v35, %v270_v33  ;;  %v248_v21 = vmul.f32 %v865_v58, %v194_v52 }
  0x9f   :  { %v267_v0 = vadd.f32 %v251_v61, %v138_v59 }
  0xa0   :  { %v398_v39 = vmax.f32 %v382_v36, 0.0 }
  0xa2   :  { %517 = vmatpush.msra.mxu0 %v398_v39  ;;  %629 = vmatpush.msra.mxu2 %v398_v39 }
  0xa3   :  { %630 = vmatpush.msra.mxu3 %v398_v39  ;;  %451 = vperm.xlu0 %656, %v421_v40  }
  0xa4   :  { %441 = vperm.xlu2 %658, %v419_v41   ;;  %446 = vperm.xlu1 %657, %v420_v42   ;;  %v91_v45 = vpop.permute.xlu1 %90 }
  0xa5   :  { %v348_v46 = vpop.permute.xlu0 %347  ;;  %v189_v62 = vpop.permute.xlu2 %188  ;;  %v137_v3 = vmul.f32 %v860_v57, %v91_v45 }
  0xa6   :  { %v381_v47 = vadd.f32 %v348_v46, %v269_v44  ;;  %v247_v29 = vmul.f32 %v865_v58, %v189_v62 }
  0xa7   :  { %v266_v6 = vadd.f32 %v250_v5, %v137_v3  ;;  %v402_v5 = vld [vmem:[%s1018_s4] sm:$0xff] }
  0xa8   :  { %v397_v49 = vmax.f32 %v381_v47, 0.0 }
  0xaa   :  { %518 = vmatpush.msra.mxu0 %v397_v49  ;;  %631 = vmatpush.msra.mxu2 %v397_v49 }
  0xab   :  { %632 = vmatpush.msra.mxu3 %v397_v49  ;;  %436 = vperm.xlu0 %656, %v418_v50  }
  0xac   :  { %v86_v54 = vpop.permute.xlu1 %85 }
  0xad   :  { %v343_v55 = vpop.permute.xlu0 %342  ;;  %v184_v8 = vpop.permute.xlu2 %183  ;;  %v136_v11 = vmul.f32 %v860_v57, %v86_v54 }
  0xae   :  { %v380_v56 = vadd.f32 %v343_v55, %v268_v53  ;;  %v246_v36 = vmul.f32 %v865_v58, %v184_v8  ;;  %v403_v8 = vld [vmem:[%s1018_s4 + $0x8] sm:$0xff] }
  0xaf   :  { %v265_v14 = vadd.f32 %v249_v13, %v136_v11  ;;  %v404_v11 = vld [vmem:[%s1018_s4 + $0x10] sm:$0xff]  ;;  %v413_v13 = vld [vmem:[%s1018_s4 + $0x58] sm:$0xff] }
  0xb0   :  { %v396_v60 = vmax.f32 %v380_v56, 0.0 }
  0xb2   :  { %519 = vmatpush.msra.mxu0 %v396_v60  ;;  %633 = vmatpush.msra.mxu2 %v396_v60 }
  0xb3   :  { %634 = vmatpush.msra.mxu3 %v396_v60 }
  0xb4   :  { %v81_v63 = vpop.permute.xlu1 %80 }
  0xb5   :  { %v338_v1 = vpop.permute.xlu0 %337  ;;  %v179_v18 = vpop.permute.xlu2 %178  ;;  %v135_v19 = vmul.f32 %v860_v57, %v81_v63 }
  0xb6   :  { %v379_v2 = vadd.f32 %v338_v1, %v267_v0  ;;  %v245_v44 = vmul.f32 %v865_v58, %v179_v18  ;;  %v415_v18 = vld [vmem:[%s1018_s4 + $0x68] sm:$0xff] }
  0xb7   :  { %v264_v22 = vadd.f32 %v248_v21, %v135_v19  ;;  %v416_v19 = vld [vmem:[%s1018_s4 + $0x70] sm:$0xff] }
  0xb8   :  { %v395_v4 = vmax.f32 %v379_v2, 0.0 }
  0xba   :  { %520 = vmatpush.msra.mxu0 %v395_v4  ;;  %635 = vmatpush.msra.mxu2 %v395_v4 }
  0xbb   :  { %636 = vmatpush.msra.mxu3 %v395_v4 }
  0xbc   :  { %v76_v7 = vpop.permute.xlu1 %75 }
  0xbd   :  { %v333_v9 = vpop.permute.xlu0 %332  ;;  %v134_v26 = vmul.f32 %v860_v57, %v76_v7  ;;  %v174_v28 = vpop.permute.xlu2 %173  ;;  %v411_v7 = vld [vmem:[%s1018_s4 + $0x48] sm:$0xff] }
  0xbe   :  { %v378_v10 = vadd.f32 %v333_v9, %v266_v6  ;;  %v244_v54 = vmul.f32 %v865_v58, %v174_v28  ;;  %v406_v6 = vld [vmem:[%s1018_s4 + $0x20] sm:$0xff]  ;;  %v407_v9 = vld [vmem:[%s1018_s4 + $0x28] sm:$0xff] }
  0xbf   :  { %v263_v30 = vadd.f32 %v247_v29, %v134_v26 }
  0xc0   :  { %v394_v12 = vmax.f32 %v378_v10, 0.0  ;;  %v412_v10 = vld [vmem:[%s1018_s4 + $0x50] sm:$0xff] }
  0xc2   :  { %521 = vmatpush.msra.mxu0 %v394_v12  ;;  %637 = vmatpush.msra.mxu2 %v394_v12 }
  0xc3   :  { %638 = vmatpush.msra.mxu3 %v394_v12  ;;  %v408_v12 = vld [vmem:[%s1018_s4 + $0x30] sm:$0xff] }
  0xc4   :  { %v71_v15 = vpop.permute.xlu1 %70 }
  0xc5   :  { %v328_v16 = vpop.permute.xlu0 %327  ;;  %v133_v34 = vmul.f32 %v860_v57, %v71_v15  ;;  %v169_v37 = vpop.permute.xlu2 %168  ;;  %v409_v15 = vld [vmem:[%s1018_s4 + $0x38] sm:$0xff] }
  0xc6   :  { %v377_v17 = vadd.f32 %v328_v16, %v265_v14  ;;  %v243_v55 = vmul.f32 %v865_v58, %v169_v37  ;;  %v405_v14 = vld [vmem:[%s1018_s4 + $0x18] sm:$0xff]  ;;  %v414_v16 = vld [vmem:[%s1018_s4 + $0x60] sm:$0xff] }
  0xc7   :  { %v262_v38 = vadd.f32 %v246_v36, %v133_v34 }
  0xc8   :  { %v393_v20 = vmax.f32 %v377_v17, 0.0  ;;  %v410_v17 = vld [vmem:[%s1018_s4 + $0x40] sm:$0xff] }
  0xca   :  { %522 = vmatpush.msra.mxu0 %v393_v20  ;;  %639 = vmatpush.msra.mxu2 %v393_v20 }
  0xcb   :  { %640 = vmatpush.msra.mxu3 %v393_v20  ;;  %v417_v20 = vld [vmem:[%s1018_s4 + $0x78] sm:$0xff] }
  0xcc   :  { %v66_v23 = vpop.permute.xlu1 %65 }
  0xcd   :  { %v323_v24 = vpop.permute.xlu0 %322  ;;  %v132_v42 = vmul.f32 %v860_v57, %v66_v23  ;;  %v164_v47 = vpop.permute.xlu2 %163 }
  0xce   :  { %v376_v25 = vadd.f32 %v323_v24, %v264_v22  ;;  %v242_v56 = vmul.f32 %v865_v58, %v164_v47 }
  0xcf   :  { %v261_v45 = vadd.f32 %v245_v44, %v132_v42 }
  0xd0   :  { %v392_v27 = vmax.f32 %v376_v25, 0.0 }
  0xd2   :  { %523 = vmatpush.msra.mxu0 %v392_v27  ;;  %641 = vmatpush.msra.mxu2 %v392_v27 }
  0xd3   :  { %642 = vmatpush.msra.mxu3 %v392_v27 }
  0xd4   :  { %v61_v31 = vpop.permute.xlu1 %60 }
  0xd5   :  { %v318_v32 = vpop.permute.xlu0 %317  ;;  %v131_v50 = vmul.f32 %v860_v57, %v61_v31  ;;  %v293_v2 = vpop.permute.xlu2 %292 }
  0xd6   :  { %v375_v33 = vadd.f32 %v318_v32, %v263_v30 }
  0xd7   :  { %v260_v60 = vadd.f32 %v244_v54, %v131_v50 }
  0xd8   :  { %v391_v35 = vmax.f32 %v375_v33, 0.0 }
  0xda   :  { %524 = vmatpush.msra.mxu0 %v391_v35  ;;  %643 = vmatpush.msra.mxu2 %v391_v35 }
  0xdb   :  { %644 = vmatpush.msra.mxu3 %v391_v35 }
  0xdc   :  { %v56_v39 = vpop.permute.xlu1 %55 }
  0xdd   :  { %v313_v40 = vpop.permute.xlu0 %312  ;;  %v130_v52 = vmul.f32 %v860_v57, %v56_v39  ;;  %v502_v30 = vpop.permute.xlu2 %501 }
  0xde   :  { %v374_v41 = vadd.f32 %v313_v40, %v262_v38 }
  0xdf   :  { %v259_v62 = vadd.f32 %v243_v55, %v130_v52 }
  0xe0   :  { %v390_v43 = vmax.f32 %v374_v41, 0.0 }
  0xe2   :  { %525 = vmatpush.msra.mxu0 %v390_v43  ;;  %645 = vmatpush.msra.mxu2 %v390_v43 }
  0xe3   :  { %646 = vmatpush.msra.mxu3 %v390_v43 }
  0xe4   :  { %v51_v46 = vpop.permute.xlu1 %50 }
  0xe5   :  { %v308_v48 = vpop.permute.xlu0 %307  ;;  %v129_v53 = vmul.f32 %v860_v57, %v51_v46 }
  0xe6   :  { %v373_v49 = vadd.f32 %v308_v48, %v261_v45  ;;  %v487_v36 = vpop.permute.xlu2 %486 }
  0xe7   :  { %v258_v59 = vadd.f32 %v242_v56, %v129_v53 }
  0xe8   :  { %v389_v51 = vmax.f32 %v373_v49, 0.0 }
  0xe9   :  { %v370_v4 = vadd.f32 %v293_v2, %v258_v59 }
  0xea   :  { %526 = vmatpush.msra.mxu0 %v389_v51  ;;  %647 = vmatpush.msra.mxu2 %v389_v51 }
  0xeb   :  { %648 = vmatpush.msra.mxu3 %v389_v51  ;;  %v386_v58 = vmax.f32 %v370_v4, 0.0 }
  0xec   :  { %v298_v61 = vpop.permute.xlu1 %297 }
  0xed   :  { %v303_v0 = vpop.permute.xlu0 %302  ;;  %v371_v1 = vadd.f32 %v298_v61, %v259_v62 }
  0xee   :  { %v372_v63 = vadd.f32 %v303_v0, %v260_v60  ;;  %v472_v48 = vpop.permute.xlu2 %471 }
  0xef   :  { %v387_v57 = vmax.f32 %v371_v1, 0.0 }
  0xf0   :  { %v388_v3 = vmax.f32 %v372_v63, 0.0 }
  0xf2   :  { %527 = vmatpush.msra.mxu0 %v388_v3  ;;  %649 = vmatpush.msra.mxu2 %v388_v3 }
  0xf3   :  { %650 = vmatpush.msra.mxu3 %v388_v3 }
  0xf4   :  { %528 = vmatpush.msra.mxu0 %v387_v57  ;;  %651 = vmatpush.msra.mxu2 %v387_v57  ;;  %v507_v28 = vpop.permute.xlu1 %506 }
  0xf5   :  { %652 = vmatpush.msra.mxu3 %v387_v57  ;;  %v512_v26 = vpop.permute.xlu0 %511 }
  0xf6   :  { %529 = vmatpush.msra.mxu0 %v386_v58  ;;  %653 = vmatpush.msra.mxu2 %v386_v58  ;;  %v457_v1 = vpop.permute.xlu2 %456 }
  0xf7   :  { %654 = vmatpush.msra.mxu3 %v386_v58  ;;  %530 = vmatmul.f32.vlgmr.msra.gmra.mxu0 %v402_v5 }
  0xf8   :  { %542 = vmatmul.f32.vlgmr.msra.gmra.mxu2 %v406_v6  ;;  %557 = vmatmul.f32.vlgmr.msra.gmra.mxu3 %v411_v7 }
  0xfd   :  { %v497_v31 = vpop.permute.xlu0 %496 }
  0xfe   :  { %v492_v35 = vpop.permute.xlu1 %491 }
  0xff   :  { %533 = vmatmul.f32.gmra.mxu0 %v403_v8 }
 0x100   :  { %545 = vmatmul.f32.gmra.mxu2 %v407_v9  ;;  %560 = vmatmul.f32.gmra.mxu3 %v412_v10 }
 0x105   :  { %v482_v37 = vpop.permute.xlu0 %481 }
 0x106   :  { %v477_v45 = vpop.permute.xlu1 %476 }
 0x107   :  { %536 = vmatmul.f32.gmra.mxu0 %v404_v11 }
 0x108   :  { %548 = vmatmul.f32.gmra.mxu2 %v408_v12  ;;  %563 = vmatmul.f32.gmra.mxu3 %v413_v13  ;;  %v442_v13 = vpop.permute.xlu2 %441 }
 0x10d   :  { %v467_v52 = vpop.permute.xlu0 %466 }
 0x10e   :  { %v462_v62 = vpop.permute.xlu1 %461 }
 0x10f   :  { %539 = vmatmul.f32.gmra.mxu0 %v405_v14 }
 0x110   :  { %551 = vmatmul.f32.gmra.mxu2 %v409_v15  ;;  %566 = vmatmul.f32.gmra.mxu3 %v414_v16 }
 0x115   :  { %v452_v4 = vpop.permute.xlu0 %451 }
 0x116   :  { %v447_v10 = vpop.permute.xlu1 %446 }
 0x118   :  { %554 = vmatmul.f32.gmra.mxu2 %v410_v17  ;;  %569 = vmatmul.f32.gmra.mxu3 %v415_v18 }
 0x11d   :  { %v437_v16 = vpop.permute.xlu0 %436 }
 0x120   :  { %572 = vmatmul.f32.gmra.mxu3 %v416_v19 }
 0x128   :  { %575 = vmatmul.f32.gmra.mxu3 %v417_v20 }
 0x174   :  { %v531_v32 = vpop.f32.mrf.mxu0 }
 0x175   :  { %v532_v17 = vadd.f32 %v531_v32, %v437_v16 }
 0x177   :  { %v579_v20 = vmax.f32 %v532_v17, 0.0 }
 0x17b   :  { %v558_v21 = vpop.f32.mrf.mxu3  ;;  %v543_v24 = vpop.f32.mrf.mxu2 }
 0x17c   :  { %v534_v38 = vpop.f32.mrf.mxu0  ;;  %v559_v56 = vadd.f32 %v558_v21, %v482_v37  ;;  %v544_v6 = vadd.f32 %v543_v24, %v457_v1  ;;  %v595_v21 = vld [vmem:[%s1019_s6] sm:$0x1] }
 0x17d   :  { %v535_v14 = vadd.f32 %v534_v38, %v442_v13 }
 0x17e   :  { %v588_v0 = vmax.f32 %v559_v56, 0.0  ;;  %v583_v11 = vmax.f32 %v544_v6, 0.0 }
 0x17f   :  { %v580_v19 = vmax.f32 %v535_v14, 0.0 }
 0x183   :  { %v561_v22 = vpop.f32.mrf.mxu3  ;;  %v546_v27 = vpop.f32.mrf.mxu2 }
 0x184   :  { %v562_v51 = vadd.f32 %v561_v22, %v487_v36  ;;  %v537_v54 = vpop.f32.mrf.mxu0  ;;  %v547_v57 = vadd.f32 %v546_v27, %v462_v62  ;;  %v597_v22 = vstv %s1020_s7 }
 0x185   :  { %v538_v12 = vadd.f32 %v537_v54, %v447_v10 }
 0x186   :  { %v589_v60 = vmax.f32 %v562_v51, 0.0  ;;  %v584_v8 = vmax.f32 %v547_v57, 0.0 }
 0x187   :  { %v581_v18 = vmax.f32 %v538_v12, 0.0 }
 0x18b   :  { %v564_v23 = vpop.f32.mrf.mxu3  ;;  %v549_v33 = vpop.f32.mrf.mxu2 }
 0x18c   :  { %v565_v49 = vadd.f32 %v564_v23, %v492_v35  ;;  %v550_v2 = vadd.f32 %v549_v33, %v467_v52  ;;  %v540_v5 = vpop.f32.mrf.mxu0 }
 0x18d   :  { %v541_v9 = vadd.f32 %v540_v5, %v452_v4 }
 0x18e   :  { %v590_v59 = vmax.f32 %v565_v49, 0.0  ;;  %v585_v7 = vmax.f32 %v550_v2, 0.0 }
 0x18f   :  { %v582_v15 = vmax.f32 %v541_v9, 0.0 }
 0x193   :  { %v567_v25 = vpop.f32.mrf.mxu3  ;;  %v552_v39 = vpop.f32.mrf.mxu2 }
 0x194   :  { %v568_v46 = vadd.f32 %v567_v25, %v497_v31  ;;  %v553_v63 = vadd.f32 %v552_v39, %v472_v48 }
 0x196   :  { %v591_v53 = vmax.f32 %v568_v46, 0.0  ;;  %v586_v58 = vmax.f32 %v553_v63, 0.0 }
 0x19b   :  { %v570_v29 = vpop.f32.mrf.mxu3  ;;  %v555_v55 = vpop.f32.mrf.mxu2 }
 0x19c   :  { %v571_v43 = vadd.f32 %v570_v29, %v502_v30  ;;  %v556_v61 = vadd.f32 %v555_v55, %v477_v45 }
 0x19e   :  { %v592_v50 = vmax.f32 %v571_v43, 0.0  ;;  %v587_v3 = vmax.f32 %v556_v61, 0.0 }
 0x1a3   :  { %v573_v34 = vpop.f32.mrf.mxu3 }
 0x1a4   :  { %v574_v41 = vadd.f32 %v573_v34, %v507_v28 }
 0x1a6   :  { %v593_v47 = vmax.f32 %v574_v41, 0.0 }
 0x1ab   :  { %v576_v40 = vpop.f32.mrf.mxu3 }
 0x1ac   :  { %v577_v42 = vadd.f32 %v576_v40, %v512_v26 }
 0x1ae   :  { %v594_v44 = vmax.f32 %v577_v42, 0.0 }
 0x1b0   :  { %598 = vmatpush.msra.mxu1 %v594_v44 }
 0x1b2   :  { %599 = vmatpush.msra.mxu1 %v593_v47 }
 0x1b4   :  { %600 = vmatpush.msra.mxu1 %v592_v50 }
 0x1b6   :  { %601 = vmatpush.msra.mxu1 %v591_v53 }
 0x1b8   :  { %602 = vmatpush.msra.mxu1 %v590_v59 }
 0x1ba   :  { %603 = vmatpush.msra.mxu1 %v589_v60 }
 0x1bc   :  { %604 = vmatpush.msra.mxu1 %v588_v0 }
 0x1be   :  { %605 = vmatpush.msra.mxu1 %v587_v3 }
 0x1c0   :  { %606 = vmatpush.msra.mxu1 %v586_v58 }
 0x1c2   :  { %607 = vmatpush.msra.mxu1 %v585_v7 }
 0x1c4   :  { %608 = vmatpush.msra.mxu1 %v584_v8 }
 0x1c6   :  { %609 = vmatpush.msra.mxu1 %v583_v11 }
 0x1c8   :  { %610 = vmatpush.msra.mxu1 %v582_v15 }
 0x1ca   :  { %611 = vmatpush.msra.mxu1 %v581_v18 }
 0x1cc   :  { %612 = vmatpush.msra.mxu1 %v580_v19 }
 0x1ce   :  { %613 = vmatpush.msra.mxu1 %v579_v20 }
 0x1cf   :  { %614 = vmatmul.f32.vlgmr.msra.gmra.mxu1 %v595_v21 }
 0x24c   :  { %v615_v23 = vpop.f32.mrf.mxu1 }
 0x24d   :  { %v616_v24 = vadd.f32 %v615_v23, %v597_v22 }
 0x24f   :  { %618 = vst [vmem:[%s1021_s8] sm:$0x1] %v616_v24 }

</bundles_post_ra>
